<compile_context>
chip_gen: v7x
topology: tpu7x:2x2x1
jax: 0.10.0
libtpu: 0.0.40
codegen_flags: <defaults>
</compile_context>

<pallas_src>
import functools

import jax
import jax.numpy as jnp
from jax import lax
from jax.experimental import pallas as pl
from jax.experimental.pallas import tpu as pltpu


def _custom_loss_kernel(x1_ref, x2_ref, t_ref, out_ref, acc_ref, *,
                        margin, eps, n_rows, tile_n, tiles_per_core,
                        mask_needed):
    c = pl.program_id(0)          # core-split axis ("parallel")
    k = pl.program_id(1)          # tile axis for this core ("arbitrary")

    @pl.when(k == 0)
    def _():
        acc_ref[...] = jnp.zeros_like(acc_ref)

    x1 = x1_ref[...].astype(jnp.float32)          # (tile_n, D)
    x2 = x2_ref[...].astype(jnp.float32)          # (tile_n, D)
    t = t_ref[...].astype(jnp.float32)            # (tile_n, 1)

    # Row-wise dot product and squared norms (lane-axis reductions).
    dot = jnp.sum(x1 * x2, axis=-1, keepdims=True)        # (tile_n, 1)
    s1 = jnp.sum(x1 * x1, axis=-1, keepdims=True)
    s2 = jnp.sum(x2 * x2, axis=-1, keepdims=True)

    # cos = dot / (max(||x1||, eps) * max(||x2||, eps)); non-overflowing form.
    cos = dot * lax.rsqrt(jnp.maximum(s1, eps * eps)) \
              * lax.rsqrt(jnp.maximum(s2, eps * eps))

    per_example = t * (1.0 - cos) + (1.0 - t) * jnp.maximum(cos - margin, 0.0)

    if mask_needed:
        # Ragged / out-of-range rows of the last tile hold stale VMEM (possibly
        # NaN/Inf); discard them.  Skipped at compile time when N is aligned.
        global_tile = c * tiles_per_core + k
        row_ids = global_tile * tile_n + lax.broadcasted_iota(
            jnp.int32, per_example.shape, 0)
        per_example = jnp.where(row_ids < n_rows, per_example, 0.0)

    # Vector-domain accumulation: broadcast the per-tile sum into the (8,128)
    # VMEM accumulator (every element holds the running per-core sum).
    acc_ref[...] += jnp.sum(per_example)

    @pl.when(k == pl.num_programs(1) - 1)
    def _():
        out_ref[...] = acc_ref[...]            # per-core partial sum


def _plan(n, d, itemsize):
    """Pick (tile_n, n_tiles, n_split, tiles_per_core, vmem_limit_bytes)."""
    # Sublane packing: 8 rows for f32, 16 for bf16, 32 for int8/fp8.
    row_align = 8 * max(1, 4 // max(itemsize, 1))
    d_pad = -(-d // 128) * 128                      # lane padding to 128

    try:
        kind = jax.devices()[0].device_kind.lower()
    except Exception:
        kind = ""
    big_vmem = ("v5" in kind) or ("v6" in kind)     # 128 MiB physical VMEM
    budget = (72 if big_vmem else 36) * 1024 * 1024     # estimated working set
    vmem_limit = (96 if big_vmem else 48) * 1024 * 1024  # <=48 MiB on v7x

    if n <= row_align:
        # Single block equal to the full array (always a legal block shape).
        return n, 1, 1, 1, vmem_limit

    # Per-row VMEM bytes: double-buffered x1,x2 (lane padded, native dtype)
    # + double-buffered target block ((tile_n,1) f32 lane-padded to 128)
    # + ~3 tile-sized f32 working temporaries (upcasts / products).
    per_row = 2 * 2 * d_pad * itemsize + 2 * 128 * 4 + 3 * d_pad * 4
    tile = max(row_align, (min(budget // per_row, n) // row_align) * row_align)
    n_tiles = -(-n // tile)
    n_split = 2 if n_tiles >= 2 else 1              # 2 TensorCores on v7x
    tiles_per_core = -(-n_tiles // n_split)
    return tile, n_tiles, n_split, tiles_per_core, vmem_limit


def custom_loss(input1, input2, target, margin=0.1, eps=1e-8):
    """Pallas TPU implementation of CustomLoss.forward.

    input1, input2: (N, D) arrays; target: (N,) array.  Returns scalar f32.
    """
    assert input1.shape == input2.shape and input1.ndim == 2
    n, d = input1.shape
    itemsize = jnp.dtype(input1.dtype).itemsize
    target2d = jnp.reshape(target, (n, 1))          # free reshape, cast in-kernel

    tile_n, n_tiles, n_split, tpc, vmem_limit = _plan(n, d, itemsize)
    mask_needed = (n % tile_n != 0) or (n_split * tpc != n_tiles)

    kernel = functools.partial(
        _custom_loss_kernel, margin=float(margin), eps=float(eps),
        n_rows=n, tile_n=tile_n, tiles_per_core=tpc, mask_needed=mask_needed)

    last_tile = n_tiles - 1

    def in_map(c, k):
        # Clamp fully-out-of-range tiles (odd n_tiles split over 2 cores) to a
        # valid tile; their rows are discarded by the in-kernel row mask.
        return (jnp.minimum(c * tpc + k, last_tile), 0)

    cost = pl.CostEstimate(
        flops=6 * n * d + 10 * n,
        transcendentals=2 * n,
        bytes_accessed=2 * n * d * itemsize
        + n * jnp.dtype(target2d.dtype).itemsize
        + 8 * n_split * 128 * 4,
    )

    out = pl.pallas_call(
        kernel,
        out_shape=jax.ShapeDtypeStruct((8 * n_split, 128), jnp.float32),
        grid_spec=pltpu.PrefetchScalarGridSpec(
            num_scalar_prefetch=0,
            grid=(n_split, tpc),
            in_specs=[
                pl.BlockSpec((tile_n, d), in_map),
                pl.BlockSpec((tile_n, d), in_map),
                pl.BlockSpec((tile_n, 1), in_map),
            ],
            out_specs=pl.BlockSpec((8, 128), lambda c, k: (c, 0)),
            scratch_shapes=[pltpu.VMEM((8, 128), jnp.float32)],
        ),
        compiler_params=pltpu.CompilerParams(
            dimension_semantics=("parallel", "arbitrary"),
            vmem_limit_bytes=vmem_limit,
        ),
        cost_estimate=cost,
    )(input1, input2, target2d)

    partials = out[::8, 0]                          # one partial sum per core
    return jnp.sum(partials) / jnp.float32(n)


def custom_loss_ref(input1, input2, target, margin=0.1, eps=1e-8):
    """Pure-JAX reference matching torch.nn.functional.cosine_similarity."""
    x1 = input1.astype(jnp.float32)
    x2 = input2.astype(jnp.float32)
    t = target.astype(jnp.float32)
    dot = jnp.sum(x1 * x2, axis=1)
    n1 = jnp.maximum(jnp.linalg.norm(x1, axis=1), eps)
    n2 = jnp.maximum(jnp.linalg.norm(x2, axis=1), eps)
    cos = dot / (n1 * n2)
    return jnp.mean(t * (1.0 - cos) + (1.0 - t) * jnp.maximum(0.0, cos - margin))


if __name__ == "__main__":
    # Case 1: small aligned batch (single block, no mask, no core split).
    k1, k2, k3 = jax.random.split(jax.random.PRNGKey(0), 3)
    N, D = 8, 32
    a1 = jax.random.normal(k1, (N, D), dtype=jnp.float32)
    a2 = jax.random.normal(k2, (N, D), dtype=jnp.float32)
    tg = jax.random.bernoulli(k3, p=0.5, shape=(N,)).astype(jnp.float32)
    loss = jax.block_until_ready(custom_loss(a1, a2, tg, margin=0.1))
    ref = custom_loss_ref(a1, a2, tg, margin=0.1)
    assert jnp.allclose(loss, ref, atol=1e-5, rtol=1e-5), (loss, ref)

    # Case 2: ragged batch (un-padded last tile + 2-way core split + row mask).
    k4, k5, k6 = jax.random.split(jax.random.PRNGKey(1), 3)
    N2, D2 = 13, 32
    b1 = jax.random.normal(k4, (N2, D2), dtype=jnp.float32)
    b2 = jax.random.normal(k5, (N2, D2), dtype=jnp.float32)
    tg2 = jax.random.bernoulli(k6, p=0.5, shape=(N2,)).astype(jnp.float32)
    loss2 = jax.block_until_ready(custom_loss(b1, b2, tg2, margin=0.1))
    ref2 = custom_loss_ref(b1, b2, tg2, margin=0.1)
    assert jnp.allclose(loss2, ref2, atol=1e-5, rtol=1e-5), (loss2, ref2)

    # Case 3: bf16 inputs (16-row sublane alignment + ragged mask path).
    k7, k8, k9 = jax.random.split(jax.random.PRNGKey(2), 3)
    N3, D3 = 40, 32
    c1 = jax.random.normal(k7, (N3, D3), dtype=jnp.bfloat16)
    c2 = jax.random.normal(k8, (N3, D3), dtype=jnp.bfloat16)
    tg3 = jax.random.bernoulli(k9, p=0.5, shape=(N3,)).astype(jnp.float32)
    loss3 = jax.block_until_ready(custom_loss(c1, c2, tg3, margin=0.1))
    ref3 = custom_loss_ref(c1, c2, tg3, margin=0.1)
    assert jnp.allclose(loss3, ref3, atol=1e-4, rtol=1e-4), (loss3, ref3)

    print("KERNEL_OK")
</pallas_src>

<mosaic_0001>
module attributes {stable_mosaic.version = 11 : i64} {
  func.func @_custom_loss_kernel(%arg0: i32, %arg1: i32, %arg2: memref<8x32xf32, #tpu.memory_space<vmem>>, %arg3: memref<8x32xf32, #tpu.memory_space<vmem>>, %arg4: memref<8x1xf32, #tpu.memory_space<vmem>>, %arg5: memref<8x128xf32, #tpu.memory_space<vmem>>, %arg6: memref<8x128xf32, #tpu.memory_space<vmem>>) attributes {dimension_semantics = [#tpu.dimension_semantics<parallel>, #tpu.dimension_semantics<arbitrary>], iteration_bounds = array<i64: 1, 1>, scalar_prefetch = 0 : i64, scratch_operands = 1 : i64, tpu.core_type = #tpu.core_type<tc>, window_params = [{transform_indices = @transform_0, window_bounds = array<i64: 8, 32>}, {transform_indices = @transform_1, window_bounds = array<i64: 8, 32>}, {transform_indices = @transform_2, window_bounds = array<i64: 8, 1>}, {transform_indices = @transform_3, window_bounds = array<i64: 8, 128>}]} {
    %c0_i32 = arith.constant 0 : i32
    %0 = arith.cmpi eq, %arg1, %c0_i32 : i32
    %1 = arith.extui %0 : i1 to i32
    %c0_i32_0 = arith.constant 0 : i32
    %2 = arith.cmpi ne, %1, %c0_i32_0 : i32
    scf.if %2 {
      %cst_21 = arith.constant 0.000000e+00 : f32
      %45 = vector.broadcast %cst_21 : f32 to vector<8x128xf32>
      %c0_22 = arith.constant 0 : index
      %c0_23 = arith.constant 0 : index
      %46 = vector.load %arg6[%c0_22, %c0_23] : memref<8x128xf32, #tpu.memory_space<vmem>>, vector<8x128xf32>
      tpu.vector_store %arg6[%c0_22, %c0_23], %45 {strides = array<i32>} : memref<8x128xf32, #tpu.memory_space<vmem>>, vector<8x128xf32>,
    } else {
    }
    %c0 = arith.constant 0 : index
    %c0_1 = arith.constant 0 : index
    %3 = vector.load %arg2[%c0, %c0_1] : memref<8x32xf32, #tpu.memory_space<vmem>>, vector<8x32xf32>
    %c0_2 = arith.constant 0 : index
    %c0_3 = arith.constant 0 : index
    %4 = vector.load %arg3[%c0_2, %c0_3] : memref<8x32xf32, #tpu.memory_space<vmem>>, vector<8x32xf32>
    %c0_4 = arith.constant 0 : index
    %c0_5 = arith.constant 0 : index
    %5 = vector.load %arg4[%c0_4, %c0_5] : memref<8x1xf32, #tpu.memory_space<vmem>>, vector<8x1xf32>
    %6 = arith.mulf %3, %4 : vector<8x32xf32>
    %cst = arith.constant dense<0.000000e+00> : vector<8xf32>
    %7 = vector.multi_reduction <add>, %6, %cst [1] : vector<8x32xf32> to vector<8xf32>
    %8 = vector.shape_cast %7 : vector<8xf32> to vector<8x1xf32>
    %9 = arith.mulf %3, %3 : vector<8x32xf32>
    %cst_6 = arith.constant dense<0.000000e+00> : vector<8xf32>
    %10 = vector.multi_reduction <add>, %9, %cst_6 [1] : vector<8x32xf32> to vector<8xf32>
    %11 = vector.shape_cast %10 : vector<8xf32> to vector<8x1xf32>
    %12 = arith.mulf %4, %4 : vector<8x32xf32>
    %cst_7 = arith.constant dense<0.000000e+00> : vector<8xf32>
    %13 = vector.multi_reduction <add>, %12, %cst_7 [1] : vector<8x32xf32> to vector<8xf32>
    %14 = vector.shape_cast %13 : vector<8xf32> to vector<8x1xf32>
    %cst_8 = arith.constant 1.000000e-16 : f32
    %15 = vector.broadcast %cst_8 : f32 to vector<8x1xf32>
    %16 = arith.maximumf %11, %15 : vector<8x1xf32>
    %17 = math.rsqrt %16 : vector<8x1xf32>
    %18 = arith.mulf %8, %17 : vector<8x1xf32>
    %cst_9 = arith.constant 1.000000e-16 : f32
    %19 = vector.broadcast %cst_9 : f32 to vector<8x1xf32>
    %20 = arith.maximumf %14, %19 : vector<8x1xf32>
    %21 = math.rsqrt %20 : vector<8x1xf32>
    %22 = arith.mulf %18, %21 : vector<8x1xf32>
    %cst_10 = arith.constant 1.000000e+00 : f32
    %23 = vector.broadcast %cst_10 : f32 to vector<8x1xf32>
    %24 = arith.subf %23, %22 : vector<8x1xf32>
    %25 = arith.mulf %5, %24 : vector<8x1xf32>
    %cst_11 = arith.constant 1.000000e+00 : f32
    %26 = vector.broadcast %cst_11 : f32 to vector<8x1xf32>
    %27 = arith.subf %26, %5 : vector<8x1xf32>
    %cst_12 = arith.constant 1.000000e-01 : f32
    %28 = vector.broadcast %cst_12 : f32 to vector<8x1xf32>
    %29 = arith.subf %22, %28 : vector<8x1xf32>
    %cst_13 = arith.constant 0.000000e+00 : f32
    %30 = vector.broadcast %cst_13 : f32 to vector<8x1xf32>
    %31 = arith.maximumf %29, %30 : vector<8x1xf32>
    %32 = arith.mulf %27, %31 : vector<8x1xf32>
    %33 = arith.addf %25, %32 : vector<8x1xf32>
    %c0_14 = arith.constant 0 : index
    %c0_15 = arith.constant 0 : index
    %34 = vector.load %arg6[%c0_14, %c0_15] : memref<8x128xf32, #tpu.memory_space<vmem>>, vector<8x128xf32>
    %35 = vector.shape_cast %33 : vector<8x1xf32> to vector<1x8x1xf32>
    %cst_16 = arith.constant dense<0.000000e+00> : vector<1xf32>
    %36 = vector.multi_reduction <add>, %35, %cst_16 [1, 2] : vector<1x8x1xf32> to vector<1xf32>
    %37 = vector.shape_cast %36 : vector<1xf32> to vector<1x1x1xf32>
    %38 = vector.extract %37[0, 0, 0] : f32 from vector<1x1x1xf32>
    %39 = vector.broadcast %38 : f32 to vector<8x128xf32>
    %40 = arith.addf %34, %39 : vector<8x128xf32>
    %c0_17 = arith.constant 0 : index
    %c0_18 = arith.constant 0 : index
    %41 = vector.load %arg6[%c0_17, %c0_18] : memref<8x128xf32, #tpu.memory_space<vmem>>, vector<8x128xf32>
    tpu.vector_store %arg6[%c0_17, %c0_18], %40 {strides = array<i32>} : memref<8x128xf32, #tpu.memory_space<vmem>>, vector<8x128xf32>,
    %c0_i32_19 = arith.constant 0 : i32
    %42 = arith.cmpi eq, %arg1, %c0_i32_19 : i32
    %43 = arith.extui %42 : i1 to i32
    %c0_i32_20 = arith.constant 0 : i32
    %44 = arith.cmpi ne, %43, %c0_i32_20 : i32
    scf.if %44 {
      %c0_21 = arith.constant 0 : index
      %c0_22 = arith.constant 0 : index
      %45 = vector.load %arg6[%c0_21, %c0_22] : memref<8x128xf32, #tpu.memory_space<vmem>>, vector<8x128xf32>
      %c0_23 = arith.constant 0 : index
      %c0_24 = arith.constant 0 : index
      %46 = vector.load %arg5[%c0_23, %c0_24] : memref<8x128xf32, #tpu.memory_space<vmem>>, vector<8x128xf32>
      tpu.vector_store %arg5[%c0_23, %c0_24], %45 {strides = array<i32>} : memref<8x128xf32, #tpu.memory_space<vmem>>, vector<8x128xf32>,
    } else {
    }
    return
  }
  func.func @transform_0(%arg0: i32, %arg1: i32) -> (i32, i32) {
    %c1_i32 = arith.constant 1 : i32
    %0 = arith.muli %arg0, %c1_i32 : i32
    %1 = arith.addi %0, %arg1 : i32
    %c0_i32 = arith.constant 0 : i32
    %2 = arith.minsi %1, %c0_i32 : i32
    %c0_i32_0 = arith.constant 0 : i32
    %c0_i32_1 = arith.constant 0 : i32
    return %2, %c0_i32_0 : i32, i32
  }
  func.func @transform_1(%arg0: i32, %arg1: i32) -> (i32, i32) {
    %c1_i32 = arith.constant 1 : i32
    %0 = arith.muli %arg0, %c1_i32 : i32
    %1 = arith.addi %0, %arg1 : i32
    %c0_i32 = arith.constant 0 : i32
    %2 = arith.minsi %1, %c0_i32 : i32
    %c0_i32_0 = arith.constant 0 : i32
    %c0_i32_1 = arith.constant 0 : i32
    return %2, %c0_i32_0 : i32, i32
  }
  func.func @transform_2(%arg0: i32, %arg1: i32) -> (i32, i32) {
    %c1_i32 = arith.constant 1 : i32
    %0 = arith.muli %arg0, %c1_i32 : i32
    %1 = arith.addi %0, %arg1 : i32
    %c0_i32 = arith.constant 0 : i32
    %2 = arith.minsi %1, %c0_i32 : i32
    %c0_i32_0 = arith.constant 0 : i32
    %c0_i32_1 = arith.constant 0 : i32
    return %2, %c0_i32_0 : i32, i32
  }
  func.func @transform_3(%arg0: i32, %arg1: i32) -> (i32, i32) {
    %c0_i32 = arith.constant 0 : i32
    %c0_i32_0 = arith.constant 0 : i32
    return %arg0, %c0_i32 : i32, i32
  }
}

</mosaic_0001>

<bundles_post_ra>
// kernel: tpu_custom_call.1
= control target key start
LH: loop header
LB: loop body
LE: loop exit
PB: predicated region body
PF: predicated region fallthrough
CT: control target
= control target key end

     0   :  { %8 = vsyncpa [#allocation4], 0  ;;  %s281_s0 = inlined_call_operand.vmem [shape: f32[8,32], index: 0, kind: input, shape index: {}]   ;;  %s282_s1 = inlined_call_operand.hbm [shape: f32[8,32], index: 1, kind: input, shape index: {}]   ;;  %s283_s2 = inlined_call_operand.vmem [shape: f32[8,1], index: 2, kind: input, shape index: {}]   ;;  %s284_s3 = inlined_call_operand.hbm [shape: f32[8,128], index: 3, kind: output, shape index: {}]  }
   0x1   :  { %9 = vsyncpa [#allocation5], 0  ;;  %s229_s12 = smov [#allocation3]   ;;  %s181_s16 = scalar_lea.hbm %s282_s1, 128 }
   0x2   :  { %s33_s13 = sshll.u32 %s229_s12, 4  ;;  %p182_p0 = scmp.ne.s32.totalorder %s282_s1, %s181_s16  ;;  %s34_s13 = int_to_ptr.vmem [resolvable:$true] %s33_s13 }
   0x3   :  { %p185_p1 = scmp.lt.u32.totalorder %s181_s16, %s282_s1 }
   0x5   :  { %p187_p2 = pnand %p185_p1, %p182_p0 }
   0x7   :  { %190 = shalt.err (!%p187_p2)
}
   0x8   :  { %s191_s21 = scalar_lea.vmem %s34_s13, 128  ;;  %p196_p4 = scmp.lt.s32.totalorder %s34_s13, %s34_s13 }
   0x9   :  { %p192_p3 = scmp.ne.s32.totalorder %s34_s13, %s191_s21  ;;  %p197_p5 = scmp.lt.s32.totalorder %s191_s21, %s191_s21 }
   0xb   :  { %p198_p6 = por %p197_p5, %p196_p4 }
   0xd   :  { %p199_p7 = pnand %p198_p6, %p192_p3 }
   0xf   :  { %202 = shalt.err (!%p199_p7)
}
  0x10   :  { %36 = dma.hbm_to_vmem [thread:$0]  %s282_s1, 128, %s34_s13, [#allocation4]  }
  0x11   :  { %225 = dma.done.wait [#allocation4], 128  }
  0x12   :  { %226 = vsyncadd [#allocation4], 4294967168  ;;  %v94_v0 = vld [vmem:[%s281_s0] sm:$0xff]  ;;  %vm98_vm0 = vcmask 261120   ;;  %vm124_vm1 = vcmask 7168  }
  0x13   :  { %v95_v1 = vld [vmem:[#allocation3] sm:$0xff]  ;;  %v102_v2 = vmul.f32 %v94_v0, %v94_v0 }
  0x14   :  { %v106_v3 = vmul.f32 %v95_v1, %v95_v1  ;;  %v97_v4 = vmul.f32 %v95_v1, %v94_v0  ;;  %v96_v16 = vld [vmem:[%s283_s2] sm:$0xff]  ;;  %s230_s2 = smov [#allocation6]  }
  0x15   :  { %v103_v5 = vsel %vm98_vm0, %v102_v2, 0.0  ;;  %v118_v20 = vsub.f32 1.0, %v96_v16  ;;  %s149_s26 = sshll.u32 %s230_s2, 4  ;;  %s150_s26 = int_to_ptr.vmem [resolvable:$true] %s149_s26 }
  0x16   :  { %v99_v6 = vsel %vm98_vm0, %v97_v4, 0.0  ;;  %104 = vadd.xlane.f32.xlu0 %v103_v5  ;;  %v107_v7 = vsel %vm98_vm0, %v106_v3, 0.0  ;;  %s203_s28 = scalar_lea.vmem %s150_s26, 128  ;;  %p208_p9 = scmp.lt.s32.totalorder %s150_s26, %s150_s26 }
  0x17   :  { %100 = vadd.xlane.f32.xlu1 %v99_v6  ;;  %p204_p8 = scmp.ne.s32.totalorder %s150_s26, %s203_s28  ;;  %p209_p10 = scmp.lt.s32.totalorder %s203_s28, %s203_s28 }
  0x19   :  { %p210_p11 = por %p209_p10, %p208_p9 }
  0x1a   :  { %108 = vadd.xlane.f32.xlu0 %v107_v7 }
  0x1b   :  { %p211_p12 = pnand %p210_p11, %p204_p8 }
  0xa3   :  { %v105_v8 = vpop.xlane.xlu0 %104 }
  0xa4   :  { %v110_v9 = vmax.f32 %v105_v8, 1e-16  ;;  %v101_v13 = vpop.xlane.xlu1 %100 }
  0xa6   :  { %177 = vrsqrt.f32 %v110_v9 }
  0xa7   :  { %v109_v10 = vpop.xlane.xlu0 %108 }
  0xa8   :  { %v113_v11 = vmax.f32 %v109_v10, 1e-16 }
  0xaa   :  { %179 = vrsqrt.f32 %v113_v11 }
  0xb0   :  { %v178_v12 = vpop.eup %177 }
  0xb1   :  { %v112_v14 = vmul.f32 %v178_v12, %v101_v13 }
  0xb4   :  { %v180_v15 = vpop.eup %179 }
  0xb5   :  { %v115_v17 = vmul.f32 %v180_v15, %v112_v14 }
  0xb7   :  { %v116_v18 = vsub.f32 1.0, %v115_v17  ;;  %v172_v19 = vadd.f32 -0.1, %v115_v17 }
  0xb9   :  { %v120_v21 = vmax.f32 %v172_v19, 0.0  ;;  %v117_v22 = vmul.f32 %v116_v18, %v96_v16 }
  0xbb   :  { %v121_v23 = vmul.f32 %v120_v21, %v118_v20 }
  0xbd   :  { %v122_v24 = vadd.f32 %v121_v23, %v117_v22 }
  0xbf   :  { %v125_v25 = vsel %vm124_vm1, %v122_v24, 0.0 }
  0xc0   :  { %126 = vadd.xlane.f32.xlu1 %v125_v25 }
 0x14d   :  { %v127_v26 = vpop.xlane.xlu1 %126 }
 0x14e   :  { %v128_v27 = vrot.slane %v127_v26, 4 }
 0x150   :  { %v129_v28 = vadd.f32 %v128_v27, %v127_v26 }
 0x152   :  { %v130_v29 = vrot.slane %v129_v28, 2 }
 0x154   :  { %v131_v30 = vadd.f32 %v130_v29, %v129_v28 }
 0x156   :  { %v132_v31 = vrot.slane %v131_v30, 1 }
 0x158   :  { %v133_v32 = vadd.f32 %v132_v31, %v131_v30 }
 0x15a   :  { %173 = vpush %v133_v32 }
 0x18b   :  { %s174_s27 = spop %173 }
 0x18c   :  { %v135_v33 = vstv %s174_s27 }
 0x18d   :  { %142 = vst [vmem:[#allocation6] sm:$0xff] %v135_v33 }
 0x18e   :  { %214 = shalt.err (!%p211_p12)
}
 0x18f   :  { %s215_s4 = scalar_lea.hbm %s284_s3, 128 }
 0x190   :  { %p216_p13 = scmp.ne.s32.totalorder %s284_s3, %s215_s4  ;;  %p219_p0 = scmp.lt.u32.totalorder %s215_s4, %s284_s3 }
 0x192   :  { %p221_p1 = pnand %p219_p0, %p216_p13 }
 0x194   :  { %224 = shalt.err (!%p221_p1)
}
 0x195   :  { %152 = dma.vmem_to_hbm [thread:$0]  %s150_s26, 128, %s284_s3, [#allocation5]  }
 0x196   :  { %227 = dma.done.wait [#allocation5], 128  }
 0x197   :  { %228 = vsyncadd [#allocation5], 4294967168 }
 0x198   :  { %156 = vsyncpa [#allocation4], 1 }
 0x199   :  { %157 = vsyncpa [#allocation5], 1 }

</bundles_post_ra>
